<compile_context>
chip_gen: v5e
topology: v5e:2x2
jax: 0.10.0
libtpu: 0.0.40
codegen_flags: <defaults>
</compile_context>

<pallas_src>
import jax
import jax.numpy as jnp
from jax.experimental import pallas as pl
from jax.experimental.pallas import tpu as pltpu

EPS = 1e-5


def _prenorm_conv_kernel(x_ref, gamma_ref, w_ref, b_ref, o_ref):
    # x_ref: (1, C, TS) tile (NCFHW layout, spatial on lanes)
    # gamma_ref: (C, 1); w_ref: (C_out, C_in) = (C, C); b_ref: (C, 1)
    x = x_ref[0].astype(jnp.float32)                        # (C, TS)
    inv_c = jnp.float32(1.0 / x.shape[0])

    # LayerNorm stats over channels (sublane axis) in f32 (stable two-pass form).
    mean = jnp.sum(x, axis=0, keepdims=True) * inv_c        # (1, TS)
    diff = x - mean
    var = jnp.sum(diff * diff, axis=0, keepdims=True) * inv_c  # unbiased=False
    xn = diff * jax.lax.rsqrt(var + EPS) * gamma_ref[...].astype(jnp.float32)

    # fn = 1x1x1 conv  <=>  y = W @ xn + b  (contract C; no transpose needed).
    # Keep MXU operands in the input dtype (bf16-native on v6e/v7x).
    xn = xn.astype(x_ref.dtype)
    y = jnp.dot(w_ref[...], xn, preferred_element_type=jnp.float32)
    y = y + b_ref[...].astype(jnp.float32)
    o_ref[0] = y.astype(o_ref.dtype)


def prenorm_pallas(x_ncfhw, gamma, conv_w, conv_b, *, tile_s=None,
                   vmem_limit_bytes=32 * 1024 * 1024):
    """x_ncfhw: (B, C, F, H, W); gamma: (C,); conv_w: (C_out, C_in); conv_b: (C,)."""
    B, C, F, H, W = x_ncfhw.shape
    S = F * H * W
    # Pure metadata reshape (merging trailing contiguous dims) -> no HBM copy.
    x3 = x_ncfhw.reshape(B, C, S)
    itemsize = jnp.dtype(x_ncfhw.dtype).itemsize

    if tile_s is None:
        # Budget: ~double-buffered input + output (C, tile_s) tiles plus headroom
        # must fit the scoped VMEM limit (params are tiny).
        max_tile = max(128, (vmem_limit_bytes // (6 * C * itemsize)) // 128 * 128)
        tile_s = min(4096, max_tile)
    tile_s = min(tile_s, S)
    if tile_s < S:
        # Must be a multiple of 128 unless it spans the full spatial extent.
        tile_s = max(128, (tile_s // 128) * 128)
        tile_s = min(tile_s, S)

    grid = (B, pl.cdiv(S, tile_s))
    gamma2 = gamma.reshape(C, 1)
    bias2 = conv_b.reshape(C, 1)

    out3 = pl.pallas_call(
        _prenorm_conv_kernel,
        out_shape=jax.ShapeDtypeStruct((B, C, S), x_ncfhw.dtype),
        grid_spec=pltpu.PrefetchScalarGridSpec(
            num_scalar_prefetch=0,
            grid=grid,
            in_specs=[
                pl.BlockSpec((1, C, tile_s), lambda b, s: (b, 0, s)),  # x tile
                pl.BlockSpec((C, 1), lambda b, s: (0, 0)),             # gamma
                pl.BlockSpec((C, C), lambda b, s: (0, 0)),             # conv weight
                pl.BlockSpec((C, 1), lambda b, s: (0, 0)),             # conv bias
            ],
            out_specs=pl.BlockSpec((1, C, tile_s), lambda b, s: (b, 0, s)),
        ),
        compiler_params=pltpu.CompilerParams(
            dimension_semantics=("parallel", "parallel"),
            vmem_limit_bytes=vmem_limit_bytes,
        ),
    )(x3, gamma2, conv_w, bias2)

    # Free reshape back to NCFHW.
    return out3.reshape(B, C, F, H, W)


def prenorm_reference(x_ncfhw, gamma, conv_w, conv_b):
    x = x_ncfhw.astype(jnp.float32)
    mean = jnp.mean(x, axis=1, keepdims=True)
    var = jnp.mean((x - mean) ** 2, axis=1, keepdims=True)
    xn = (x - mean) / jnp.sqrt(var + EPS) * gamma.reshape(1, -1, 1, 1, 1)
    y = jnp.einsum('oc,bcfhw->bofhw', conv_w.astype(jnp.float32), xn) \
        + conv_b.reshape(1, -1, 1, 1, 1)
    return y.astype(x_ncfhw.dtype)


if __name__ == "__main__":
    key = jax.random.PRNGKey(0)
    k_x, k_g, k_w, k_b = jax.random.split(key, 4)

    B, C, F, H, W = 2, 8, 4, 16, 16   # small shapes; S = F*H*W = 1024
    x = jax.random.normal(k_x, (B, C, F, H, W), dtype=jnp.float32)

    # LayerNorm gamma is ones-initialized in the module; add a small deterministic
    # jitter so the scale path is exercised.
    gamma = jnp.ones((C,), jnp.float32) + 0.01 * jax.random.normal(k_g, (C,), jnp.float32)
    conv_w = 0.1 * jax.random.normal(k_w, (C, C), dtype=jnp.float32)
    conv_b = 0.1 * jax.random.normal(k_b, (C,), dtype=jnp.float32)

    out = prenorm_pallas(x, gamma, conv_w, conv_b)
    out = jax.block_until_ready(out)

    ref = prenorm_reference(x, gamma, conv_w, conv_b)
    assert out.shape == (B, C, F, H, W)
    max_err = float(jnp.max(jnp.abs(out - ref)))
    assert jnp.allclose(out, ref, atol=1e-4, rtol=1e-4), f"mismatch vs reference (max abs err {max_err})"

    print("KERNEL_OK")
</pallas_src>

<mosaic_0001>
module attributes {stable_mosaic.version = 11 : i64} {
  func.func @_prenorm_conv_kernel(%arg0: i32, %arg1: i32, %arg2: memref<1x8x1024xf32, #tpu.memory_space<vmem>>, %arg3: memref<8x1xf32, #tpu.memory_space<vmem>>, %arg4: memref<8x8xf32, #tpu.memory_space<vmem>>, %arg5: memref<8x1xf32, #tpu.memory_space<vmem>>, %arg6: memref<1x8x1024xf32, #tpu.memory_space<vmem>>) attributes {dimension_semantics = [#tpu.dimension_semantics<parallel>, #tpu.dimension_semantics<parallel>], iteration_bounds = array<i64: 2, 1>, scalar_prefetch = 0 : i64, scratch_operands = 0 : i64, tpu.core_type = #tpu.core_type<tc>, window_params = [{transform_indices = @transform_0, window_bounds = array<i64: 1, 8, 1024>}, {pipeline_mode = #tpu.pipeline_mode<synchronous>, transform_indices = @transform_1, window_bounds = array<i64: 8, 1>}, {pipeline_mode = #tpu.pipeline_mode<synchronous>, transform_indices = @transform_2, window_bounds = array<i64: 8, 8>}, {pipeline_mode = #tpu.pipeline_mode<synchronous>, transform_indices = @transform_3, window_bounds = array<i64: 8, 1>}, {transform_indices = @transform_4, window_bounds = array<i64: 1, 8, 1024>}]} {
    %c0 = arith.constant 0 : index
    %c0_0 = arith.constant 0 : index
    %c0_1 = arith.constant 0 : index
    %0 = vector.load %arg2[%c0, %c0_0, %c0_1] : memref<1x8x1024xf32, #tpu.memory_space<vmem>>, vector<1x8x1024xf32>
    %1 = vector.shape_cast %0 : vector<1x8x1024xf32> to vector<8x1024xf32>
    %cst = arith.constant dense<0.000000e+00> : vector<1024xf32>
    %2 = vector.multi_reduction <add>, %1, %cst [0] : vector<8x1024xf32> to vector<1024xf32>
    %3 = vector.shape_cast %2 : vector<1024xf32> to vector<1x1024xf32>
    %cst_2 = arith.constant 1.250000e-01 : f32
    %4 = vector.broadcast %cst_2 : f32 to vector<1x1024xf32>
    %5 = arith.mulf %3, %4 : vector<1x1024xf32>
    %6 = vector.broadcast %5 : vector<1x1024xf32> to vector<8x1024xf32>
    %7 = arith.subf %1, %6 : vector<8x1024xf32>
    %8 = arith.mulf %7, %7 : vector<8x1024xf32>
    %cst_3 = arith.constant dense<0.000000e+00> : vector<1024xf32>
    %9 = vector.multi_reduction <add>, %8, %cst_3 [0] : vector<8x1024xf32> to vector<1024xf32>
    %10 = vector.shape_cast %9 : vector<1024xf32> to vector<1x1024xf32>
    %cst_4 = arith.constant 1.250000e-01 : f32
    %11 = vector.broadcast %cst_4 : f32 to vector<1x1024xf32>
    %12 = arith.mulf %10, %11 : vector<1x1024xf32>
    %cst_5 = arith.constant 9.99999974E-6 : f32
    %13 = vector.broadcast %cst_5 : f32 to vector<1x1024xf32>
    %14 = arith.addf %12, %13 : vector<1x1024xf32>
    %15 = math.rsqrt %14 : vector<1x1024xf32>
    %16 = vector.broadcast %15 : vector<1x1024xf32> to vector<8x1024xf32>
    %17 = arith.mulf %7, %16 : vector<8x1024xf32>
    %c0_6 = arith.constant 0 : index
    %c0_7 = arith.constant 0 : index
    %18 = vector.load %arg3[%c0_6, %c0_7] : memref<8x1xf32, #tpu.memory_space<vmem>>, vector<8x1xf32>
    %19 = vector.broadcast %18 : vector<8x1xf32> to vector<8x1024xf32>
    %20 = arith.mulf %17, %19 : vector<8x1024xf32>
    %c0_8 = arith.constant 0 : index
    %c0_9 = arith.constant 0 : index
    %21 = vector.load %arg4[%c0_8, %c0_9] : memref<8x8xf32, #tpu.memory_space<vmem>>, vector<8x8xf32>
    %cst_10 = arith.constant dense<0.000000e+00> : vector<8x1024xf32>
    %22 = tpu.matmul %21, %20, %cst_10 {dimension_numbers = #tpu.dot_dimension_numbers<[1], [0], [0], [1], [0, 0, 1, 1], [], []>} : vector<8x8xf32>, vector<8x1024xf32>, vector<8x1024xf32> -> vector<8x1024xf32>
    %c0_11 = arith.constant 0 : index
    %c0_12 = arith.constant 0 : index
    %23 = vector.load %arg5[%c0_11, %c0_12] : memref<8x1xf32, #tpu.memory_space<vmem>>, vector<8x1xf32>
    %24 = vector.broadcast %23 : vector<8x1xf32> to vector<8x1024xf32>
    %25 = arith.addf %22, %24 : vector<8x1024xf32>
    %c0_13 = arith.constant 0 : index
    %c0_14 = arith.constant 0 : index
    %c0_15 = arith.constant 0 : index
    %26 = vector.load %arg6[%c0_13, %c0_14, %c0_15] : memref<1x8x1024xf32, #tpu.memory_space<vmem>>, vector<1x8x1024xf32>
    %27 = vector.shape_cast %26 : vector<1x8x1024xf32> to vector<8x1024xf32>
    %28 = vector.shape_cast %25 : vector<8x1024xf32> to vector<1x8x1024xf32>
    tpu.vector_store %arg6[%c0_13, %c0_14, %c0_15], %28 {strides = array<i32>} : memref<1x8x1024xf32, #tpu.memory_space<vmem>>, vector<1x8x1024xf32>,
    return
  }
  func.func @transform_0(%arg0: i32, %arg1: i32) -> (i32, i32, i32) {
    %c0_i32 = arith.constant 0 : i32
    %c0_i32_0 = arith.constant 0 : i32
    return %arg0, %c0_i32, %arg1 : i32, i32, i32
  }
  func.func @transform_1(%arg0: i32, %arg1: i32) -> (i32, i32) {
    %c0_i32 = arith.constant 0 : i32
    %c0_i32_0 = arith.constant 0 : i32
    %c0_i32_1 = arith.constant 0 : i32
    return %c0_i32, %c0_i32_0 : i32, i32
  }
  func.func @transform_2(%arg0: i32, %arg1: i32) -> (i32, i32) {
    %c0_i32 = arith.constant 0 : i32
    %c0_i32_0 = arith.constant 0 : i32
    %c0_i32_1 = arith.constant 0 : i32
    return %c0_i32, %c0_i32_0 : i32, i32
  }
  func.func @transform_3(%arg0: i32, %arg1: i32) -> (i32, i32) {
    %c0_i32 = arith.constant 0 : i32
    %c0_i32_0 = arith.constant 0 : i32
    %c0_i32_1 = arith.constant 0 : i32
    return %c0_i32, %c0_i32_0 : i32, i32
  }
  func.func @transform_4(%arg0: i32, %arg1: i32) -> (i32, i32, i32) {
    %c0_i32 = arith.constant 0 : i32
    %c0_i32_0 = arith.constant 0 : i32
    return %arg0, %c0_i32, %arg1 : i32, i32, i32
  }
}

</mosaic_0001>

<bundles_post_ra>
// kernel: tpu_custom_call.1
= control target key start
LH: loop header
LB: loop body
LE: loop exit
PB: predicated region body
PF: predicated region fallthrough
CT: control target
= control target key end

     0   :  { %9 = vsyncpa [#allocation3], 0  ;;  %s1333_s0 = inlined_call_operand.hbm [shape: f32[2,8,1024], index: 0, kind: input, shape index: {}]   ;;  %s1334_s1 = inlined_call_operand.vmem [shape: f32[8,1], index: 1, kind: input, shape index: {}]   ;;  %s1335_s2 = inlined_call_operand.vmem [shape: f32[8,8], index: 2, kind: input, shape index: {}]   ;;  %s1336_s3 = inlined_call_operand.vmem [shape: f32[8,1], index: 3, kind: input, shape index: {}]   ;;  %s1337_s4 = inlined_call_operand.hbm [shape: f32[2,8,1024], index: 4, kind: output, shape index: {}]  }
   0x1   :  { %11 = vsyncpa [#allocation3 + $0x1], 0 }
   0x2   :  { %12 = vsyncpa [#allocation4], 0 }
   0x3   :  { %14 = vsyncpa [#allocation4 + $0x1], 0  ;;  %s1009_s15 = smov 0   ;;  %s1011_s16 = smov 0  }
   0x4   :  { %s1013_s17 = smov 0   ;;  %s1015_s18 = smov 0  }
   0x5   :  { %s1017_s19 = smov 0   ;;  %s1019_s20 = smov 0  }
   0x6 LB: > { %s764_s21 = sadd.s32 4294967295, %s981_s20   ;;  %s765_s22 = sadd.s32 4294967294, %s981_s20   ;;  %s981_s20 = sphi %s1019_s20, %s20_s20   ;;  %s977_s19 = sphi %s1017_s19, %s1360_s19   ;;  %s973_s18 = sphi %s1015_s18, %s1359_s18   ;;  %s969_s17 = sphi %s1013_s17, %s1358_s17   ;;  %s965_s16 = sphi %s1011_s16, %s1357_s16   ;;  %s961_s15 = sphi %s1009_s15, %s1356_s15  }
   0x7   : > { %s32_s23 = sadd.s32 1, %s977_s19  ;;  %s41_s24 = sadd.s32 1, %s969_s17 }
   0x8   : > { %p34_p0 = scmp.ge.s32.totalorder %s32_s23, 2  ;;  %p48_p1 = scmp.ne.s32.totalorder %s969_s17, %s965_s16 }
   0x9   : > { %p49_p2 = scmp.eq.s32.totalorder %s981_s20, 0  ;;  %p54_p3 = scmp.ne.s32.totalorder %s965_s16, %s961_s15 }
   0xa   : > { %s1362_s23 = smov (%p34_p0, %s32_s23), 0  ;;  %p55_p5 = scmp.eq.s32.totalorder %s764_s21, 0 }
   0xb   : > { %p1050_p4 = por %p49_p2, %p48_p1  ;;  %s36_s26 = ssub.s32 %s977_s19, %s1362_s23 }
   0xc   : > { %p143_p6 = scmp.eq.s32.totalorder %s764_s21, 1  ;;  %p39_p7 = scmp.eq.s32.totalorder %s36_s26, 0 }
   0xd   : > { %p1056_p8 = por %p55_p5, %p54_p3  ;;  %p149_p10 = scmp.eq.s32.totalorder %s765_s22, 1 }
   0xe   : > { %p1060_p9 = por %p143_p6, %p48_p1  ;;  %p767_p12 = scmp.ge.s32.totalorder %s981_s20, 2 }
   0xf   : > { %s1065_s29 = scalar_select %p39_p7, %s969_s17, %s41_s24  }
  0x10   : > { %p1067_p11 = por %p149_p10, %p54_p3  ;;  %p801_p13 = scmp.lt.s32.totalorder %s981_s20, 2 }
  0x11   : > { %s178_s5 = sand.u32 1, %s969_s17   ;;  %s787_s7 = sshll.u32 %s977_s19, 6 }
  0x12   : > { %s768_s6 = sshll.u32 %s178_s5, 6  ;;  %s189_s10 = scalar_lea.hbm %s1333_s0, %s787_s7 }
  0x13   : > { %s182_s11 = scalar_lea.vmem [#allocation2], %s768_s6  ;;  %s191_s13 = sshll.u32 %s189_s10, 4  ;;  %s192_s13 = int_to_ptr.hbm [resolvable:$true] %s191_s13 }
  0x14   : > { %s193_s12 = sshll.u32 %s182_s11, 4  ;;  %p794_p0 = pnand %p801_p13, %p1050_p4  ;;  %s194_s12 = int_to_ptr.vmem [resolvable:$true] %s193_s12 }
  0x15   : > { %p771_p1 = scmp.ge.s32.totalorder %s981_s20, 1  ;;  %p198_p2 = scmp.lt.s32.totalorder %s981_s20, 3 }
  0x16   : > { %s179_s14 = scalar_lea.sflag [#allocation3], %s178_s5 }
  0x17   : > { %796 = dma.hbm_to_vmem [thread:$0]  (!%p794_p0), %s192_s13, 1024, %s194_s12, %s179_s14  }
  0x18   : > { %p199_p3 = pnand %p771_p1, %p198_p2 }
  0x19   : > { %s1083_s21 = sand.u32 (!%p199_p3), 1, %s965_s16  }
  0x1a   : > { %202 = sbr.rel (%p199_p3) target bundleno = 300 (0x12c), region = 36  ;;  %s772_s22 = sshll.u32 (!%p199_p3), %s1083_s21, 6 }
  0x1b   : > { %s205_s24 = scalar_lea.sflag (!%p199_p3), [#allocation3], %s1083_s21  ;;  %s208_s26 = scalar_lea.vmem (!%p199_p3), [#allocation2], %s772_s22 }
  0x1f   : > { %952 = dma.done.wait (%p1056_p8), %s205_s24, 1024  }
  0x20   : > { %954 = vsyncadd (%p1056_p8), %s205_s24, 4294966272  ;;  %v983_v0 = vmov 0   ;;  %v468_v1 = vld [vmem:[%s1334_s1] sm:$0xff]  ;;  %v237_v4 = vld [vmem:[%s208_s26 + $0x8] sm:$0xff]  ;;  %s233_s9 = scalar_lea.vmem [#allocation5], %s772_s22  ;;  %s788_s10 = sshll.u32 %s973_s18, 6 }
  0x21   : > { %852 = vset.pattern.permute.xlu0 %v983_v0  ;;  %v483_v2 = vld [vmem:[%s1336_s3] sm:$0xff]  ;;  %v238_v5 = vld [vmem:[%s208_s26 + $0x10] sm:$0xff]  ;;  %v250_v7 = vrot.slane %v237_v4, 4  ;;  %v239_v9 = vld [vmem:[%s208_s26 + $0x18] sm:$0xff]  ;;  %s675_s13 = scalar_lea.hbm %s1337_s4, %s788_s10  ;;  %s677_s14 = sshll.u32 %s233_s9, 4  ;;  %s678_s14 = int_to_ptr.vmem [resolvable:$true] %s677_s14 }
  0x22   : > { %471 = vperm.xlu0 %852, %v468_v1   ;;  %v236_v3 = vld [vmem:[%s208_s26] sm:$0xff]  ;;  %v256_v8 = vrot.slane %v238_v5, 4  ;;  %v262_v10 = vrot.slane %v239_v9, 4  ;;  %v241_v16 = vld [vmem:[%s208_s26 + $0x28] sm:$0xff]  ;;  %v242_v17 = vld [vmem:[%s208_s26 + $0x30] sm:$0xff]  ;;  %s679_s22 = sshll.u32 %s675_s13, 4  ;;  %s680_s22 = int_to_ptr.hbm [resolvable:$true] %s679_s22 }
  0x23   : > { %v244_v6 = vrot.slane %v236_v3, 4  ;;  %v240_v11 = vld [vmem:[%s208_s26 + $0x20] sm:$0xff]  ;;  %v251_v13 = vadd.f32 %v250_v7, %v237_v4  ;;  %v274_v19 = vrot.slane %v241_v16, 4  ;;  %v280_v20 = vrot.slane %v242_v17, 4  ;;  %v1099_v21 = vld [vmem:[%s208_s26 + $0x38] sm:$0xff]  ;;  %s662_s18 = scalar_lea.sflag [#allocation4], %s1083_s21 }
  0x24   : > { %v257_v14 = vadd.f32 %v256_v8, %v238_v5  ;;  %v268_v15 = vrot.slane %v240_v11, 4  ;;  %v263_v18 = vadd.f32 %v262_v10, %v239_v9  ;;  %v286_v29 = vrot.slane %v1099_v21, 4  ;;  %s913_s24 = sshra.s32 %s680_s22, 4  ;;  %s919_s6 = scalar_lea.hbm %s1337_s4, 128  ;;  %s914_s24 = int_to_ptr.hbm [resolvable:$true] %s913_s24 }
  0x25   : > { %v245_v12 = vadd.f32 %v244_v6, %v236_v3  ;;  %v252_v23 = vrot.slane %v251_v13, 2  ;;  %v275_v27 = vadd.f32 %v274_v19, %v241_v16  ;;  %v281_v28 = vadd.f32 %v280_v20, %v242_v17  ;;  %s915_s26 = scalar_lea.hbm %s914_s24, 64  ;;  %p920_p7 = scmp.lt.s32.totalorder %s914_s24, %s1337_s4 }
  0x26   : > { %v258_v24 = vrot.slane %v257_v14, 2  ;;  %v269_v25 = vadd.f32 %v268_v15, %v240_v11  ;;  %v264_v26 = vrot.slane %v263_v18, 2  ;;  %v287_v37 = vadd.f32 %v286_v29, %v1099_v21  ;;  %p916_p4 = scmp.ne.s32.totalorder %s914_s24, %s915_s26  ;;  %p921_p8 = scmp.lt.s32.totalorder %s919_s6, %s915_s26 }
  0x27   : > { %v246_v22 = vrot.slane %v245_v12, 2  ;;  %v253_v31 = vadd.f32 %v252_v23, %v251_v13  ;;  %v276_v35 = vrot.slane %v275_v27, 2  ;;  %v282_v36 = vrot.slane %v281_v28, 2 }
  0x28   : > { %v259_v32 = vadd.f32 %v258_v24, %v257_v14  ;;  %v270_v33 = vrot.slane %v269_v25, 2  ;;  %v265_v34 = vadd.f32 %v264_v26, %v263_v18  ;;  %v288_v45 = vrot.slane %v287_v37, 2  ;;  %p917_p5 = pnand %p916_p4, %p1060_p9  ;;  %p922_p10 = por %p921_p8, %p920_p7 }
  0x29   : > { %v247_v30 = vadd.f32 %v246_v22, %v245_v12  ;;  %v254_v39 = vrot.slane %v253_v31, 1  ;;  %v277_v43 = vadd.f32 %v276_v35, %v275_v27  ;;  %v283_v44 = vadd.f32 %v282_v36, %v281_v28 }
  0x2a   : > { %486 = vperm.xlu0 %852, %v483_v2   ;;  %v260_v40 = vrot.slane %v259_v32, 1  ;;  %v271_v41 = vadd.f32 %v270_v33, %v269_v25  ;;  %v266_v42 = vrot.slane %v265_v34, 1  ;;  %v289_v53 = vadd.f32 %v288_v45, %v287_v37  ;;  %p918_p6 = pneg %p917_p5 }
  0x2b   : > { %v248_v38 = vrot.slane %v247_v30, 1  ;;  %v255_v47 = vadd.f32 %v254_v39, %v253_v31  ;;  %v278_v51 = vrot.slane %v277_v43, 1  ;;  %v284_v52 = vrot.slane %v283_v44, 1 }
  0x2c   : > { %v261_v48 = vadd.f32 %v260_v40, %v259_v32  ;;  %v272_v49 = vrot.slane %v271_v41, 1  ;;  %v267_v50 = vadd.f32 %v266_v42, %v265_v34  ;;  %v290_v61 = vrot.slane %v289_v53, 1  ;;  %p923_p13 = pnand %p922_p10, %p918_p6 }
  0x2d   : > { %v249_v46 = vadd.f32 %v248_v38, %v247_v30  ;;  %v293_v55 = vmul.f32 0.125, %v255_v47  ;;  %v279_v59 = vadd.f32 %v278_v51, %v277_v43  ;;  %v285_v60 = vadd.f32 %v284_v52, %v283_v44 }
  0x2e   : > { %v294_v56 = vmul.f32 0.125, %v261_v48  ;;  %v273_v57 = vadd.f32 %v272_v49, %v271_v41  ;;  %v295_v58 = vmul.f32 0.125, %v267_v50  ;;  %v291_v8 = vadd.f32 %v290_v61, %v289_v53 }
  0x2f   : > { %v292_v54 = vmul.f32 0.125, %v249_v46  ;;  %v1105_v63 = vsub.f32 %v237_v4, %v293_v55  ;;  %v297_v6 = vmul.f32 0.125, %v279_v59  ;;  %v298_v7 = vmul.f32 0.125, %v285_v60 }
  0x30   : > { %v1107_v0 = vsub.f32 %v238_v5, %v294_v56  ;;  %v296_v1 = vmul.f32 0.125, %v273_v57  ;;  %v1109_v2 = vsub.f32 %v239_v9, %v295_v58  ;;  %v299_v14 = vmul.f32 0.125, %v291_v8 }
  0x31   : > { %v1103_v62 = vsub.f32 %v236_v3, %v292_v54  ;;  %v309_v12 = vmul.f32 %v1105_v63, %v1105_v63  ;;  %v1121_v5 = vsub.f32 %v241_v16, %v297_v6  ;;  %v1123_v9 = vsub.f32 %v242_v17, %v298_v7 }
  0x32   : > { %v310_v3 = vmul.f32 %v1107_v0, %v1107_v0  ;;  %v1117_v13 = vsub.f32 %v240_v11, %v296_v1  ;;  %v311_v4 = vmul.f32 %v1109_v2, %v1109_v2  ;;  %v1132_v24 = vsub.f32 %v1099_v21, %v299_v14 }
  0x33   : > { %v308_v10 = vmul.f32 %v1103_v62, %v1103_v62  ;;  %v322_v18 = vrot.slane %v309_v12, 4  ;;  %v313_v23 = vmul.f32 %v1121_v5, %v1121_v5  ;;  %v314_v11 = vmul.f32 %v1123_v9, %v1123_v9 }
  0x34   : > { %v328_v19 = vrot.slane %v310_v3, 4  ;;  %v312_v20 = vmul.f32 %v1117_v13, %v1117_v13  ;;  %v334_v22 = vrot.slane %v311_v4, 4  ;;  %v315_v30 = vmul.f32 %v1132_v24, %v1132_v24 }
  0x35   : > { %v316_v15 = vrot.slane %v308_v10, 4  ;;  %v323_v17 = vadd.f32 %v322_v18, %v309_v12  ;;  %v346_v28 = vrot.slane %v313_v23, 4  ;;  %v352_v29 = vrot.slane %v314_v11, 4 }
  0x36   : > { %v329_v25 = vadd.f32 %v328_v19, %v310_v3  ;;  %v340_v26 = vrot.slane %v312_v20, 4  ;;  %v335_v27 = vadd.f32 %v334_v22, %v311_v4  ;;  %v358_v35 = vrot.slane %v315_v30, 4 }
  0x37   : > { %v317_v16 = vadd.f32 %v316_v15, %v308_v10  ;;  %v324_v33 = vrot.slane %v323_v17, 2  ;;  %v347_v34 = vadd.f32 %v346_v28, %v313_v23  ;;  %v353_v37 = vadd.f32 %v352_v29, %v314_v11 }
  0x38   : > { %v341_v32 = vadd.f32 %v340_v26, %v312_v20  ;;  %v330_v36 = vrot.slane %v329_v25, 2  ;;  %v336_v38 = vrot.slane %v335_v27, 2  ;;  %v359_v21 = vadd.f32 %v358_v35, %v315_v30 }
  0x39   : > { %v318_v31 = vrot.slane %v317_v16, 2  ;;  %v325_v41 = vadd.f32 %v324_v33, %v323_v17  ;;  %v348_v42 = vrot.slane %v347_v34, 2  ;;  %v354_v44 = vrot.slane %v353_v37, 2 }
  0x3a   : > { %v342_v40 = vrot.slane %v341_v32, 2  ;;  %v331_v43 = vadd.f32 %v330_v36, %v329_v25  ;;  %v337_v45 = vadd.f32 %v336_v38, %v335_v27  ;;  %v360_v46 = vrot.slane %v359_v21, 2 }
  0x3b   : > { %v319_v39 = vadd.f32 %v318_v31, %v317_v16  ;;  %v326_v49 = vrot.slane %v325_v41, 1  ;;  %v349_v50 = vadd.f32 %v348_v42, %v347_v34  ;;  %v355_v52 = vadd.f32 %v354_v44, %v353_v37 }
  0x3c   : > { %v343_v48 = vadd.f32 %v342_v40, %v341_v32  ;;  %v332_v51 = vrot.slane %v331_v43, 1  ;;  %v338_v53 = vrot.slane %v337_v45, 1  ;;  %v361_v54 = vadd.f32 %v360_v46, %v359_v21 }
  0x3d   : > { %v320_v47 = vrot.slane %v319_v39, 1  ;;  %v327_v57 = vadd.f32 %v326_v49, %v325_v41  ;;  %v350_v58 = vrot.slane %v349_v50, 1  ;;  %v356_v60 = vrot.slane %v355_v52, 1 }
  0x3e   : > { %v344_v56 = vrot.slane %v343_v48, 1  ;;  %v333_v59 = vadd.f32 %v332_v51, %v331_v43  ;;  %v339_v61 = vadd.f32 %v338_v53, %v337_v45  ;;  %v362_v1 = vrot.slane %v361_v54, 1 }
  0x3f   : > { %v321_v55 = vadd.f32 %v320_v47, %v319_v39  ;;  %v365_v8 = vmul.f32 0.125, %v327_v57  ;;  %v351_v10 = vadd.f32 %v350_v58, %v349_v50  ;;  %v357_v3 = vadd.f32 %v356_v60, %v355_v52 }
  0x40   : > { %v345_v7 = vadd.f32 %v344_v56, %v343_v48  ;;  %v366_v12 = vmul.f32 0.125, %v333_v59  ;;  %v367_v4 = vmul.f32 0.125, %v339_v61  ;;  %v363_v14 = vadd.f32 %v362_v1, %v361_v54 }
  0x41   : > { %v364_v6 = vmul.f32 0.125, %v321_v55  ;;  %v1138_v19 = vadd.f32 1e-05, %v365_v8  ;;  %v369_v20 = vmul.f32 0.125, %v351_v10  ;;  %v370_v23 = vmul.f32 0.125, %v357_v3 }
  0x42   : > { %v368_v18 = vmul.f32 0.125, %v345_v7  ;;  %v1140_v22 = vadd.f32 1e-05, %v366_v12  ;;  %v1142_v11 = vadd.f32 1e-05, %v367_v4  ;;  %v371_v16 = vmul.f32 0.125, %v363_v14 }
  0x43   : > { %v1136_v15 = vadd.f32 1e-05, %v364_v6  ;;  %v1148_v25 = vadd.f32 1e-05, %v369_v20  ;;  %v1151_v26 = vadd.f32 1e-05, %v370_v23  ;;  %vm396_vm2 = vweird.f32 %v1138_v19 }
  0x44   : > { %v1145_v17 = vadd.f32 1e-05, %v368_v18  ;;  %v1154_v27 = vadd.f32 1e-05, %v371_v16  ;;  %vm406_vm4 = vweird.f32 %v1140_v22  ;;  %vm416_vm7 = vweird.f32 %v1142_v11 }
  0x45   : > { %853 = vrsqrt.f32 %v1136_v15  ;;  %vm386_vm0 = vweird.f32 %v1136_v15  ;;  %vm436_vm13 = vweird.f32 %v1148_v25 }
  0x46   : > { %855 = vrsqrt.f32 %v1138_v19  ;;  %vm426_vm10 = vweird.f32 %v1145_v17 }
  0x47   : > { %857 = vrsqrt.f32 %v1140_v22 }
  0x48   : > { %859 = vrsqrt.f32 %v1142_v11 }
  0x49   : > { %861 = vrsqrt.f32 %v1145_v17 }
  0x4a   : > { %863 = vrsqrt.f32 %v1148_v25 }
  0x4b   : > { %v1158_v28 = vpop.eup %853  ;;  %865 = vrsqrt.f32 %v1151_v26 }
  0x4c   : > { %v1161_v29 = vpop.eup %855  ;;  %867 = vrsqrt.f32 %v1154_v27  ;;  %v381_v33 = vmul.f32 %v1158_v28, %v1136_v15  ;;  %vm387_vm1 = vweird.f32 %v1158_v28 }
  0x4d   : > { %v1164_v30 = vpop.eup %857  ;;  %v391_v34 = vmul.f32 %v1161_v29, %v1138_v19  ;;  %vm397_vm3 = vweird.f32 %v1161_v29  ;;  %vm1207_vm6 = vmor %vm386_vm0, %vm387_vm1  ;;  %vm446_vm0 = vweird.f32 %v1151_v26 }
  0x4e   : > { %v1166_v31 = vpop.eup %859  ;;  %v401_v38 = vmul.f32 %v1164_v30, %v1140_v22  ;;  %v382_v39 = vmul.f32 %v1158_v28, %v381_v33  ;;  %vm407_vm5 = vweird.f32 %v1164_v30  ;;  %vm1214_vm9 = vmor %vm396_vm2, %vm397_vm3  ;;  %vm456_vm3 = vweird.f32 %v1154_v27 }
  0x4f   : > { %v1168_v32 = vpop.eup %861  ;;  %v411_v21 = vmul.f32 %v1166_v31, %v1142_v11  ;;  %v392_v40 = vmul.f32 %v1161_v29, %v391_v34  ;;  %vm417_vm8 = vweird.f32 %v1166_v31  ;;  %vm1220_vm12 = vmor %vm406_vm4, %vm407_vm5 }
  0x50   : > { %v1174_v35 = vpop.eup %863  ;;  %v421_v41 = vmul.f32 %v1168_v32, %v1145_v17  ;;  %v402_v45 = vmul.f32 %v1164_v30, %v401_v38  ;;  %v383_v47 = vmul.f32 0.5, %v382_v39  ;;  %vm427_vm11 = vweird.f32 %v1168_v32  ;;  %vm1228_vm15 = vmor %vm416_vm7, %vm417_vm8 }
  0x51   : > { %v1176_v36 = vpop.eup %865  ;;  %v431_v42 = vmul.f32 %v1174_v35, %v1148_v25  ;;  %v412_v46 = vmul.f32 %v1166_v31, %v411_v21  ;;  %v393_v48 = vmul.f32 0.5, %v392_v40  ;;  %vm437_vm14 = vweird.f32 %v1174_v35  ;;  %vm1234_vm2 = vmor %vm426_vm10, %vm427_vm11 }
  0x52   : > { %v1178_v37 = vpop.eup %867  ;;  %v441_v43 = vmul.f32 %v1176_v36, %v1151_v26  ;;  %v422_v49 = vmul.f32 %v1168_v32, %v421_v41  ;;  %v403_v53 = vmul.f32 0.5, %v402_v45  ;;  %v384_v55 = vsub.f32 1.5, %v383_v47  ;;  %vm1242_vm5 = vmor %vm436_vm13, %vm437_vm14 }
  0x53   : > { %v451_v44 = vmul.f32 %v1178_v37, %v1154_v27  ;;  %v432_v50 = vmul.f32 %v1174_v35, %v431_v42  ;;  %v413_v54 = vmul.f32 0.5, %v412_v46  ;;  %v394_v56 = vsub.f32 1.5, %v393_v48 }
  0x54   : > { %v442_v51 = vmul.f32 %v1176_v36, %v441_v43  ;;  %v423_v57 = vmul.f32 0.5, %v422_v49  ;;  %v404_v61 = vsub.f32 1.5, %v403_v53  ;;  %v385_v6 = vmul.f32 %v1158_v28, %v384_v55 }
  0x55   : > { %v452_v52 = vmul.f32 %v1178_v37, %v451_v44  ;;  %v433_v58 = vmul.f32 0.5, %v432_v50  ;;  %v414_v1 = vsub.f32 1.5, %v413_v54  ;;  %v395_v8 = vmul.f32 %v1161_v29, %v394_v56 }
  0x56   : > { %v443_v59 = vmul.f32 0.5, %v442_v51  ;;  %v424_v12 = vsub.f32 1.5, %v423_v57  ;;  %v405_v18 = vmul.f32 %v1164_v30, %v404_v61  ;;  %vm447_vm1 = vweird.f32 %v1176_v36 }
  0x57   : > { %v453_v60 = vmul.f32 0.5, %v452_v52  ;;  %v434_v3 = vsub.f32 1.5, %v433_v58  ;;  %v415_v19 = vmul.f32 %v1166_v31, %v414_v1  ;;  %vm457_vm4 = vweird.f32 %v1178_v37  ;;  %vm1253_vm7 = vmor %vm446_vm0, %vm447_vm1 }
  0x58   : > { %v444_v14 = vsub.f32 1.5, %v443_v59  ;;  %v425_v23 = vmul.f32 %v1168_v32, %v424_v12  ;;  %v389_v17 = vsel %vm1207_vm6, %v1158_v28, %v385_v6  ;;  %v399_v25 = vsel %vm1214_vm9, %v1161_v29, %v395_v8  ;;  %vm458_vm6 = vmor %vm456_vm3, %vm457_vm4 }
  0x59   : > { %v454_v15 = vsub.f32 1.5, %v453_v60  ;;  %v435_v11 = vmul.f32 %v1174_v35, %v434_v3  ;;  %v409_v34 = vsel %vm1220_vm12, %v1164_v30, %v405_v18  ;;  %v419_v28 = vsel %vm1228_vm15, %v1166_v31, %v415_v19 }
  0x5a   : > { %v445_v26 = vmul.f32 %v1176_v36, %v444_v14  ;;  %v460_v38 = vmul.f32 %v389_v17, %v1103_v62  ;;  %v461_v29 = vmul.f32 %v399_v25, %v1105_v63  ;;  %v429_v21 = vsel %vm1234_vm2, %v1168_v32, %v425_v23 }
  0x5b   : > { %v455_v33 = vmul.f32 %v1178_v37, %v454_v15  ;;  %v439_v39 = vsel %vm1242_vm5, %v1174_v35, %v435_v11  ;;  %v462_v40 = vmul.f32 %v409_v34, %v1107_v0  ;;  %v463_v30 = vmul.f32 %v419_v28, %v1109_v2  ;;  %v482_v2 = vld [vmem:[%s1335_s2] sm:$0xff] }
  0x5c   : > { %v449_v31 = vsel %vm1253_vm7, %v1176_v36, %v445_v26  ;;  %v464_v63 = vmul.f32 %v429_v21, %v1117_v13  ;;  %v465_v41 = vmul.f32 %v439_v39, %v1121_v5  ;;  %vm489_vm8 = vcmask 64512  }
  0x5d   : > { %v459_v62 = vsel %vm458_vm6, %v1178_v37, %v455_v33  ;;  %v466_v32 = vmul.f32 %v449_v31, %v1123_v9 }
  0x5e   : > { %v467_v43 = vmul.f32 %v459_v62, %v1132_v24 }
  0x94   : > { %v472_v42 = vpop.permute.xlu0 %471 }
  0x95   : > { %v474_v35 = vmul.f32 %v472_v42, %v460_v38  ;;  %v475_v44 = vmul.f32 %v472_v42, %v461_v29  ;;  %v476_v0 = vmul.f32 %v472_v42, %v462_v40  ;;  %v477_v45 = vmul.f32 %v472_v42, %v463_v30 }
  0x96   : > { %v478_v36 = vmul.f32 %v472_v42, %v464_v63  ;;  %v479_v13 = vmul.f32 %v472_v42, %v465_v41  ;;  %v480_v5 = vmul.f32 %v472_v42, %v466_v32  ;;  %v481_v37 = vmul.f32 %v472_v42, %v467_v43 }
  0x97   : > { %508 = vmatpush.msra.mxu0 %v474_v35  ;;  %528 = vmatpush.msra.mxu1 %v475_v44 }
  0x98   : > { %548 = vmatpush.msra.mxu2 %v476_v0  ;;  %568 = vmatpush.msra.mxu3 %v477_v45 }
  0x99   : > { %774 = vmatmul.msk.f32.vlgmr.msra.gmra.mxu0 %vm489_vm8, %v482_v2  ;;  %775 = vmatmul.msk.f32.vlgmr.msra.gmra.mxu1 %vm489_vm8, %v482_v2 }
  0x9a   : > { %776 = vmatmul.msk.f32.vlgmr.msra.gmra.mxu2 %vm489_vm8, %v482_v2  ;;  %777 = vmatmul.msk.f32.vlgmr.msra.gmra.mxu3 %vm489_vm8, %v482_v2 }
  0x9b   : > { %588 = vmatpush.msrb.mxu0 %v478_v36  ;;  %608 = vmatpush.msrb.mxu1 %v479_v13 }
  0x9c   : > { %628 = vmatpush.msrb.mxu2 %v480_v5  ;;  %648 = vmatpush.msrb.mxu3 %v481_v37  ;;  %v487_v9 = vpop.permute.xlu0 %486 }
  0xa1   : > { %778 = vmatmul.msk.f32.vlgmr.msrb.gmra.mxu0 %vm489_vm8, %v482_v2  ;;  %779 = vmatmul.msk.f32.vlgmr.msrb.gmra.mxu1 %vm489_vm8, %v482_v2 }
  0xa2   : > { %780 = vmatmul.msk.f32.vlgmr.msrb.gmra.mxu2 %vm489_vm8, %v482_v2  ;;  %781 = vmatmul.msk.f32.vlgmr.msrb.gmra.mxu3 %vm489_vm8, %v482_v2 }
 0x116   : > { %v510_v24 = vpop.f32.mrf.mxu0  ;;  %v530_v46 = vpop.f32.mrf.mxu1 }
 0x117   : > { %v511_v47 = vadd.f32 %v510_v24, %v487_v9  ;;  %v531_v48 = vadd.f32 %v530_v46, %v487_v9 }
 0x119   : > { %653 = vst [vmem:[%s233_s9] sm:$0xff] %v511_v47 }
 0x11a   : > { %654 = vst [vmem:[%s233_s9 + $0x8] sm:$0xff] %v531_v48 }
 0x11d   : > { %v550_v49 = vpop.f32.mrf.mxu2  ;;  %v570_v50 = vpop.f32.mrf.mxu3 }
 0x11e   : > { %v551_v51 = vadd.f32 %v550_v49, %v487_v9  ;;  %v571_v52 = vadd.f32 %v570_v50, %v487_v9  ;;  %v590_v53 = vpop.f32.mrf.mxu0  ;;  %v610_v54 = vpop.f32.mrf.mxu1 }
 0x11f   : > { %v591_v55 = vadd.f32 %v590_v53, %v487_v9  ;;  %v611_v56 = vadd.f32 %v610_v54, %v487_v9 }
 0x120   : > { %655 = vst [vmem:[%s233_s9 + $0x10] sm:$0xff] %v551_v51 }
 0x121   : > { %656 = vst [vmem:[%s233_s9 + $0x18] sm:$0xff] %v571_v52 }
 0x122   : > { %657 = vst [vmem:[%s233_s9 + $0x20] sm:$0xff] %v591_v55 }
 0x123   : > { %658 = vst [vmem:[%s233_s9 + $0x28] sm:$0xff] %v611_v56 }
 0x125   : > { %v630_v57 = vpop.f32.mrf.mxu2  ;;  %v650_v58 = vpop.f32.mrf.mxu3 }
 0x126   : > { %v631_v59 = vadd.f32 %v630_v57, %v487_v9  ;;  %v651_v60 = vadd.f32 %v650_v58, %v487_v9 }
 0x128   : > { %659 = vst [vmem:[%s233_s9 + $0x30] sm:$0xff] %v631_v59 }
 0x129   : > { %660 = vst [vmem:[%s233_s9 + $0x38] sm:$0xff] %v651_v60 }
 0x12a   : > { %926 = shalt.err (!%p923_p13)
}
 0x12b   : > { %791 = dma.vmem_to_hbm [thread:$0]  (%p1060_p9), %s678_s14, 1024, %s680_s22, %s662_s18  }
 0x12c PF: > { %s691_s21 = sand.u32 1, %s961_s15   ;;  %p798_p0 = pnand %p767_p12, %p1067_p11 }
 0x12d   : > { %s692_s8 = scalar_lea.sflag [#allocation4], %s691_s21 }
 0x12e   : > { %p799_p1 = pneg %p798_p0 }
 0x130   : > { %956 = dma.done.wait (%p799_p1), %s692_s8, 1024  }
 0x131   : > { %958 = vsyncadd (%p799_p1), %s692_s8, 4294966272  ;;  %s20_s20 = sadd.s32 1, %s981_s20   ;;  %s1356_s15 = smov %s965_s16 }
 0x132   : > { %p17_p2 = scmp.ge.s32.totalorder %s20_s20, 4   ;;  %s1357_s16 = smov %s969_s17 }
 0x133   : > { %s1358_s17 = smov %s1065_s29  ;;  %s1359_s18 = smov %s977_s19 }
 0x134   : > { %s1360_s19 = smov %s1362_s23  ;;  %19 = sbr.rel (!%p17_p2) target bundleno = 6 (0x6), region = 81 }
 0x139   :  { %698 = vsyncpa [#allocation3], 1 }
 0x13a   :  { %700 = vsyncpa [#allocation3 + $0x1], 1 }
 0x13b   :  { %701 = vsyncpa [#allocation4], 1 }
 0x13c   :  { %703 = vsyncpa [#allocation4 + $0x1], 1 }

</bundles_post_ra>
